<compile_context>
chip_gen: v5e
topology: v5e:2x2
jax: 0.10.0
libtpu: 0.0.40
codegen_flags: <defaults>
</compile_context>

<pallas_src>
import functools

import jax
import jax.numpy as jnp
from jax.experimental import pallas as pl
from jax.experimental.pallas import tpu as pltpu

_EPS = 1e-5
_NEG_SLOPE = 0.2


# ----------------------------- Pallas kernels -------------------------------

def _conv_kernel(p_ref, w_ref, b_ref, *rest, fuse_norm, fuse_act, emit_stats):
    """One (image n, Cout tile j, spatial tile m) output tile; grid axis 3 accumulates K.

    p_ref : (1, TM, TK)  bf16  im2col patch rows (image n, spatial tile m)
    w_ref : (TK, TN)     bf16  flattened conv weights (Cout zero-padded)
    b_ref : (1, TN)      f32   conv bias (zero on padded channels)
    o_ref : (1, TM, TN)  f32   conv output tile, channel-last (lane-dense stores)
    stats_ref (optional): (1, 1, 2, TN) f32  per-tile channel [sum, sumsq]
    acc_ref: (TM, TN)    f32   VMEM accumulator (persists across the k axis)
    """
    if emit_stats:
        o_ref, stats_ref, acc_ref = rest
    else:
        o_ref, acc_ref = rest
        stats_ref = None

    k = pl.program_id(3)
    psum = jnp.dot(p_ref[0], w_ref[...], preferred_element_type=jnp.float32)

    @pl.when(k == 0)
    def _init():
        # Fold the conv bias into the first accumulator write (no separate
        # broadcast-init + read-modify-write pass over the accumulator).
        acc_ref[...] = psum + b_ref[...]

    @pl.when(k > 0)
    def _accum():
        acc_ref[...] += psum

    @pl.when(k == pl.num_programs(3) - 1)
    def _epilogue():
        y = acc_ref[...]                                      # (TM, TN) f32
        if emit_stats:
            row_sum = jnp.sum(y, axis=0, keepdims=True)       # (1, TN)
            row_sq = jnp.sum(y * y, axis=0, keepdims=True)    # (1, TN)
            stats_ref[0, 0] = jnp.concatenate([row_sum, row_sq], axis=0)
        if fuse_norm:
            # Whole spatial extent resident in this tile -> single-pass InstanceNorm.
            mean = jnp.mean(y, axis=0, keepdims=True)
            yc = y - mean
            var = jnp.mean(yc * yc, axis=0, keepdims=True)    # biased var (PyTorch)
            y = yc * jax.lax.rsqrt(var + _EPS)                # EUP rsqrt (free slot)
        if fuse_act:
            y = jnp.where(y >= 0, y, _NEG_SLOPE * y)          # LeakyReLU(0.2)
        o_ref[0] = y.astype(o_ref.dtype)                      # lane-dense, no transpose


def _norm_act_kernel(y_ref, scale_ref, shift_ref, o_ref):
    """Second pass of the tiled InstanceNorm: y*scale + shift, then LeakyReLU(0.2)."""
    y = y_ref[0] * scale_ref[0] + shift_ref[0]
    o_ref[0] = jnp.where(y >= 0, y, _NEG_SLOPE * y).astype(o_ref.dtype)


# ------------------------------ planning helpers -----------------------------

def _device_kind():
    try:
        return jax.devices()[0].device_kind.lower()
    except Exception:
        return ""


def _pick_tn(cout):
    # 256-wide output-channel tiles feed the 2x256x256 MXUs on v6e/v7x and halve how
    # often the patch slab is re-streamed; v5e's 4x128x128 MXUs keep TN=128.
    kind = _device_kind()
    if cout > 128 and ("v6" in kind or "v7" in kind):
        return 256
    return 128


def _vmem_caps():
    try:
        cap = int(pltpu.get_tpu_info().vmem_capacity_bytes)
    except Exception:
        cap = 64 * 2**20  # conservative (v7x per-core VMEM)
    budget = min(100 * 2**20, cap - 8 * 2**20)
    return cap, budget


def _working_set(tm, tk, tn):
    # Double-buffered input/output tiles + f32 accumulator scratch.
    return (2 * tm * tk * 2        # patches tile (bf16) x2 buffers
            + 2 * tk * tn * 2      # weight tile (bf16)  x2 buffers
            + 2 * tn * 4           # bias row            x2 buffers
            + 2 * tm * tn * 4      # conv-out tile (f32) x2 buffers
            + 2 * 2 * tn * 4       # stats tile (f32)    x2 buffers
            + tm * tn * 4)         # accumulator scratch


def _plan_tiles(ohw, k_dim, tn, budget, max_tm=None):
    """Pick (TM, TK).  Prefer TM == OHW (enables the single-pass fused norm)."""
    tk_opts = [t for t in (512, 256, 128) if k_dim % t == 0] or [k_dim]
    cap = ohw if max_tm is None else min(max_tm, ohw)
    if cap >= ohw:
        for tk in tk_opts:
            if _working_set(ohw, tk, tn) <= budget:
                return ohw, tk
    tm_opts = [t for t in (4096, 2048, 1024, 512, 256, 128, 64, 32, 16, 8)
               if t <= cap and ohw % t == 0]
    for tm in tm_opts:
        for tk in tk_opts:
            if _working_set(tm, tk, tn) <= budget:
                return tm, tk
    # Fallback for tiny / awkward shapes: correctness over the budget heuristic.
    return (tm_opts[-1] if tm_opts else ohw), tk_opts[-1]


# ------------------------------ host wrapper ---------------------------------

def unet_down(x, weight, bias, normalize=True, max_tm=None):
    """
    x:      (N, Cin, H, W)   float32, NCHW
    weight: (Cout, Cin, 4, 4)
    bias:   (Cout,)
    returns (N, Cout, H//2, W//2)  float32

    max_tm: optional cap on the spatial tile (testing hook for the two-pass path).
    """
    N, Cin, H, W = x.shape
    Cout = weight.shape[0]
    KH = KW = 4
    assert H % 2 == 0 and W % 2 == 0, "UNetDown expects even spatial dims"
    OH, OW = H // 2, W // 2
    OHW = OH * OW
    K = Cin * KH * KW

    TN = _pick_tn(Cout)
    Cout_pad = -(-Cout // TN) * TN
    cap, budget = _vmem_caps()
    TM, TK = _plan_tiles(OHW, K, TN, budget, max_tm)
    fused = TM == OHW
    fuse_norm = normalize and fused           # single-pass InstanceNorm in the epilogue
    two_pass = normalize and not fused        # stats in pass 1 + normalize kernel
    n_j, n_m, n_k = Cout_pad // TN, OHW // TM, K // TK

    # ---- im2col glue: bf16 NHWC taps concatenated directly into (N, OHW, K) ----
    # K ordering is (kh*KW + kw)*Cin + ci; the weight flattening below matches it.
    # TODO(synk): fold the 16 (kh,kw) taps into the kernel via strided DMA from the
    # padded input so the 4x patch matrix never materializes in HBM.
    x_nhwc = jnp.transpose(x.astype(jnp.bfloat16), (0, 2, 3, 1))   # (N, H, W, Cin) bf16
    xp = jnp.pad(x_nhwc, ((0, 0), (1, 1), (1, 1), (0, 0)))
    taps = [xp[:, kh:kh + 2 * OH:2, kw:kw + 2 * OW:2, :]
            for kh in range(KH) for kw in range(KW)]               # 16 x (N, OH, OW, Cin)
    patches = jnp.concatenate(taps, axis=-1).reshape(N, OHW, K)    # bf16, (N, OHW, K)

    w_flat = jnp.transpose(weight, (2, 3, 1, 0)).reshape(K, Cout)  # matches K ordering
    w_flat = jnp.pad(w_flat, ((0, 0), (0, Cout_pad - Cout))).astype(jnp.bfloat16)
    b_row = jnp.pad(bias.astype(jnp.float32), (0, Cout_pad - Cout)).reshape(1, Cout_pad)

    kernel = functools.partial(_conv_kernel, fuse_norm=fuse_norm,
                               fuse_act=not two_pass, emit_stats=two_pass)

    ws_bytes = _working_set(TM, TK, TN)
    vmem_limit = int(min(cap - 4 * 2**20, max(ws_bytes + 4 * 2**20, 32 * 2**20)))

    out_shapes = [jax.ShapeDtypeStruct((N, OHW, Cout_pad), jnp.float32)]
    out_specs = [pl.BlockSpec((1, TM, TN), lambda n, j, m, k: (n, m, j))]
    if two_pass:
        out_shapes.append(jax.ShapeDtypeStruct((N, n_m, 2, Cout_pad), jnp.float32))
        out_specs.append(pl.BlockSpec((1, 1, 2, TN), lambda n, j, m, k: (n, m, 0, j)))

    cost = pl.CostEstimate(
        flops=2 * N * OHW * K * Cout_pad,
        transcendentals=(N * Cout_pad) if fuse_norm else 0,
        bytes_accessed=(patches.size * 2 * n_j + w_flat.size * 2 * N * n_m
                        + N * Cout_pad * OHW * 4),
    )

    res = pl.pallas_call(
        kernel,
        out_shape=tuple(out_shapes) if two_pass else out_shapes[0],
        grid_spec=pltpu.PrefetchScalarGridSpec(
            num_scalar_prefetch=0,
            grid=(N, n_j, n_m, n_k),
            in_specs=[
                pl.BlockSpec((1, TM, TK), lambda n, j, m, k: (n, m, k)),
                pl.BlockSpec((TK, TN), lambda n, j, m, k: (k, j)),
                pl.BlockSpec((1, TN), lambda n, j, m, k: (0, j)),
            ],
            out_specs=tuple(out_specs) if two_pass else out_specs[0],
            scratch_shapes=[pltpu.VMEM((TM, TN), jnp.float32)],
        ),
        compiler_params=pltpu.CompilerParams(
            # Spatial tiles are independent -> keep them "parallel" so v7x megacore
            # gets >=2 programs even when N and n_j are small.
            dimension_semantics=("parallel", "parallel", "parallel", "arbitrary"),
            vmem_limit_bytes=vmem_limit,
        ),
        cost_estimate=cost,
    )(patches, w_flat, b_row)

    if two_pass:
        conv_out, stats = res
        s = jnp.sum(stats, axis=1)                               # (N, 2, Cout_pad), tiny
        mean = s[:, 0, :] / OHW
        var = jnp.maximum(s[:, 1, :] / OHW - mean * mean, 0.0)   # biased var (PyTorch)
        inv = jax.lax.rsqrt(var + _EPS)
        scale = inv.reshape(N, 1, Cout_pad)
        shift = (-mean * inv).reshape(N, 1, Cout_pad)
        out = pl.pallas_call(
            _norm_act_kernel,
            out_shape=jax.ShapeDtypeStruct((N, OHW, Cout_pad), jnp.float32),
            grid_spec=pltpu.PrefetchScalarGridSpec(
                num_scalar_prefetch=0,
                grid=(N, n_m, n_j),
                in_specs=[
                    pl.BlockSpec((1, TM, TN), lambda n, m, j: (n, m, j)),
                    pl.BlockSpec((1, 1, TN), lambda n, m, j: (n, 0, j)),
                    pl.BlockSpec((1, 1, TN), lambda n, m, j: (n, 0, j)),
                ],
                out_specs=pl.BlockSpec((1, TM, TN), lambda n, m, j: (n, m, j)),
            ),
            compiler_params=pltpu.CompilerParams(
                dimension_semantics=("parallel", "parallel", "parallel")),
        )(conv_out, scale, shift)
    else:
        out = res

    # Drop channel padding; NCHW permute stays in XLA (off the kernel epilogue path).
    return jnp.transpose(out[:, :, :Cout].reshape(N, OH, OW, Cout), (0, 3, 1, 2))


# ------------------------------- reference ----------------------------------

def _reference(x, weight, bias, normalize):
    out = jax.lax.conv_general_dilated(
        x, weight, window_strides=(2, 2), padding=((1, 1), (1, 1)),
        dimension_numbers=("NCHW", "OIHW", "NCHW"))
    out = out + bias.reshape(1, -1, 1, 1)
    if normalize:
        mean = out.mean(axis=(2, 3), keepdims=True)
        var = ((out - mean) ** 2).mean(axis=(2, 3), keepdims=True)
        out = (out - mean) * jax.lax.rsqrt(var + _EPS)
    return jnp.where(out >= 0, out, _NEG_SLOPE * out)


# --------------------------------- main --------------------------------------

if __name__ == "__main__":
    key = jax.random.PRNGKey(0)
    k_x, k_w, k_b = jax.random.split(key, 3)

    N, Cin, H, W = 2, 4, 16, 16
    Cout = 8

    x = jax.random.normal(k_x, (N, Cin, H, W), dtype=jnp.float32)
    weight = 0.1 * jax.random.normal(k_w, (Cout, Cin, 4, 4), dtype=jnp.float32)
    bias = 0.1 * jax.random.normal(k_b, (Cout,), dtype=jnp.float32)

    ref_norm = _reference(x, weight, bias, True)
    ref_nonorm = _reference(x, weight, bias, False)

    # 1) Fused path (full spatial extent resident, single-pass InstanceNorm epilogue).
    out = jax.block_until_ready(unet_down(x, weight, bias, normalize=True))
    assert out.shape == (N, Cout, H // 2, W // 2), out.shape
    err = float(jnp.max(jnp.abs(out - ref_norm)))
    assert err < 5e-2, f"max abs err (fused norm) {err}"

    # 2) Spatially-tiled two-pass path (forced small TM to exercise it at this size).
    out_tiled = jax.block_until_ready(unet_down(x, weight, bias, normalize=True, max_tm=16))
    err_tiled = float(jnp.max(jnp.abs(out_tiled - ref_norm)))
    assert err_tiled < 5e-2, f"max abs err (tiled norm) {err_tiled}"

    # 3) No-norm path (LeakyReLU fused into the conv epilogue).
    out_nn = jax.block_until_ready(unet_down(x, weight, bias, normalize=False))
    err_nn = float(jnp.max(jnp.abs(out_nn - ref_nonorm)))
    assert err_nn < 5e-2, f"max abs err (no norm) {err_nn}"

    print("KERNEL_OK")
</pallas_src>

<mosaic_0001>
module attributes {stable_mosaic.version = 11 : i64} {
  func.func @_conv_kernel(%arg0: i32, %arg1: i32, %arg2: i32, %arg3: i32, %arg4: memref<1x64x64xbf16, #tpu.memory_space<vmem>>, %arg5: memref<64x128xbf16, #tpu.memory_space<vmem>>, %arg6: memref<1x128xf32, #tpu.memory_space<vmem>>, %arg7: memref<1x64x128xf32, #tpu.memory_space<vmem>>, %arg8: memref<64x128xf32, #tpu.memory_space<vmem>>) attributes {dimension_semantics = [#tpu.dimension_semantics<parallel>, #tpu.dimension_semantics<parallel>, #tpu.dimension_semantics<parallel>, #tpu.dimension_semantics<arbitrary>], iteration_bounds = array<i64: 2, 1, 1, 1>, scalar_prefetch = 0 : i64, scratch_operands = 1 : i64, tpu.core_type = #tpu.core_type<tc>, window_params = [{transform_indices = @transform_0, window_bounds = array<i64: 1, 64, 64>}, {transform_indices = @transform_1, window_bounds = array<i64: 64, 128>}, {transform_indices = @transform_2, window_bounds = array<i64: 1, 128>}, {transform_indices = @transform_3, window_bounds = array<i64: 1, 64, 128>}]} {
    %c0 = arith.constant 0 : index
    %c0_0 = arith.constant 0 : index
    %c0_1 = arith.constant 0 : index
    %0 = vector.load %arg4[%c0, %c0_0, %c0_1] : memref<1x64x64xbf16, #tpu.memory_space<vmem>>, vector<1x64x64xbf16>
    %1 = vector.shape_cast %0 : vector<1x64x64xbf16> to vector<64x64xbf16>
    %c0_2 = arith.constant 0 : index
    %c0_3 = arith.constant 0 : index
    %2 = vector.load %arg5[%c0_2, %c0_3] : memref<64x128xbf16, #tpu.memory_space<vmem>>, vector<64x128xbf16>
    %cst = arith.constant dense<0.000000e+00> : vector<64x128xf32>
    %3 = tpu.matmul %1, %2, %cst {dimension_numbers = #tpu.dot_dimension_numbers<[1], [0], [0], [1], [0, 0, 1, 1], [], []>} : vector<64x64xbf16>, vector<64x128xbf16>, vector<64x128xf32> -> vector<64x128xf32>
    %c0_i32 = arith.constant 0 : i32
    %4 = arith.cmpi eq, %arg3, %c0_i32 : i32
    %5 = arith.extui %4 : i1 to i32
    %c0_i32_4 = arith.constant 0 : i32
    %6 = arith.cmpi ne, %5, %c0_i32_4 : i32
    scf.if %6 {
      %c0_9 = arith.constant 0 : index
      %c0_10 = arith.constant 0 : index
      %13 = vector.load %arg6[%c0_9, %c0_10] : memref<1x128xf32, #tpu.memory_space<vmem>>, vector<1x128xf32>
      %14 = vector.broadcast %13 : vector<1x128xf32> to vector<64x128xf32>
      %15 = arith.addf %3, %14 : vector<64x128xf32>
      %c0_11 = arith.constant 0 : index
      %c0_12 = arith.constant 0 : index
      %16 = vector.load %arg8[%c0_11, %c0_12] : memref<64x128xf32, #tpu.memory_space<vmem>>, vector<64x128xf32>
      tpu.vector_store %arg8[%c0_11, %c0_12], %15 {strides = array<i32>} : memref<64x128xf32, #tpu.memory_space<vmem>>, vector<64x128xf32>,
    } else {
    }
    %c0_i32_5 = arith.constant 0 : i32
    %7 = arith.cmpi sgt, %arg3, %c0_i32_5 : i32
    %8 = arith.extui %7 : i1 to i32
    %c0_i32_6 = arith.constant 0 : i32
    %9 = arith.cmpi ne, %8, %c0_i32_6 : i32
    scf.if %9 {
      %c0_9 = arith.constant 0 : index
      %c0_10 = arith.constant 0 : index
      %13 = vector.load %arg8[%c0_9, %c0_10] : memref<64x128xf32, #tpu.memory_space<vmem>>, vector<64x128xf32>
      %14 = arith.addf %13, %3 : vector<64x128xf32>
      %c0_11 = arith.constant 0 : index
      %c0_12 = arith.constant 0 : index
      %15 = vector.load %arg8[%c0_11, %c0_12] : memref<64x128xf32, #tpu.memory_space<vmem>>, vector<64x128xf32>
      tpu.vector_store %arg8[%c0_11, %c0_12], %14 {strides = array<i32>} : memref<64x128xf32, #tpu.memory_space<vmem>>, vector<64x128xf32>,
    } else {
    }
    %c0_i32_7 = arith.constant 0 : i32
    %10 = arith.cmpi eq, %arg3, %c0_i32_7 : i32
    %11 = arith.extui %10 : i1 to i32
    %c0_i32_8 = arith.constant 0 : i32
    %12 = arith.cmpi ne, %11, %c0_i32_8 : i32
    scf.if %12 {
      %c0_9 = arith.constant 0 : index
      %c0_10 = arith.constant 0 : index
      %13 = vector.load %arg8[%c0_9, %c0_10] : memref<64x128xf32, #tpu.memory_space<vmem>>, vector<64x128xf32>
      %cst_11 = arith.constant dense<0.000000e+00> : vector<128xf32>
      %14 = vector.multi_reduction <add>, %13, %cst_11 [0] : vector<64x128xf32> to vector<128xf32>
      %15 = vector.shape_cast %14 : vector<128xf32> to vector<1x128xf32>
      %cst_12 = arith.constant 6.400000e+01 : f32
      %16 = vector.broadcast %cst_12 : f32 to vector<1x128xf32>
      %17 = arith.divf %15, %16 : vector<1x128xf32>
      %18 = vector.broadcast %17 : vector<1x128xf32> to vector<64x128xf32>
      %19 = arith.subf %13, %18 : vector<64x128xf32>
      %20 = arith.mulf %19, %19 : vector<64x128xf32>
      %cst_13 = arith.constant dense<0.000000e+00> : vector<128xf32>
      %21 = vector.multi_reduction <add>, %20, %cst_13 [0] : vector<64x128xf32> to vector<128xf32>
      %22 = vector.shape_cast %21 : vector<128xf32> to vector<1x128xf32>
      %cst_14 = arith.constant 6.400000e+01 : f32
      %23 = vector.broadcast %cst_14 : f32 to vector<1x128xf32>
      %24 = arith.divf %22, %23 : vector<1x128xf32>
      %cst_15 = arith.constant 9.99999974E-6 : f32
      %25 = vector.broadcast %cst_15 : f32 to vector<1x128xf32>
      %26 = arith.addf %24, %25 : vector<1x128xf32>
      %27 = math.rsqrt %26 : vector<1x128xf32>
      %28 = vector.broadcast %27 : vector<1x128xf32> to vector<64x128xf32>
      %29 = arith.mulf %19, %28 : vector<64x128xf32>
      %cst_16 = arith.constant 0.000000e+00 : f32
      %30 = vector.broadcast %cst_16 : f32 to vector<64x128xf32>
      %31 = arith.cmpf oge, %29, %30 : vector<64x128xf32>
      %cst_17 = arith.constant 2.000000e-01 : f32
      %32 = vector.broadcast %cst_17 : f32 to vector<64x128xf32>
      %33 = arith.mulf %32, %29 : vector<64x128xf32>
      %34 = arith.select %31, %29, %33 : vector<64x128xi1>, vector<64x128xf32>
      %c0_18 = arith.constant 0 : index
      %c0_19 = arith.constant 0 : index
      %c0_20 = arith.constant 0 : index
      %35 = vector.load %arg7[%c0_18, %c0_19, %c0_20] : memref<1x64x128xf32, #tpu.memory_space<vmem>>, vector<1x64x128xf32>
      %36 = vector.shape_cast %35 : vector<1x64x128xf32> to vector<64x128xf32>
      %37 = vector.shape_cast %34 : vector<64x128xf32> to vector<1x64x128xf32>
      tpu.vector_store %arg7[%c0_18, %c0_19, %c0_20], %37 {strides = array<i32>} : memref<1x64x128xf32, #tpu.memory_space<vmem>>, vector<1x64x128xf32>,
    } else {
    }
    return
  }
  func.func @transform_0(%arg0: i32, %arg1: i32, %arg2: i32, %arg3: i32) -> (i32, i32, i32) {
    %c0_i32 = arith.constant 0 : i32
    return %arg0, %arg2, %arg3 : i32, i32, i32
  }
  func.func @transform_1(%arg0: i32, %arg1: i32, %arg2: i32, %arg3: i32) -> (i32, i32) {
    %c0_i32 = arith.constant 0 : i32
    return %arg3, %arg1 : i32, i32
  }
  func.func @transform_2(%arg0: i32, %arg1: i32, %arg2: i32, %arg3: i32) -> (i32, i32) {
    %c0_i32 = arith.constant 0 : i32
    %c0_i32_0 = arith.constant 0 : i32
    return %c0_i32, %arg1 : i32, i32
  }
  func.func @transform_3(%arg0: i32, %arg1: i32, %arg2: i32, %arg3: i32) -> (i32, i32, i32) {
    %c0_i32 = arith.constant 0 : i32
    return %arg0, %arg2, %arg1 : i32, i32, i32
  }
}

</mosaic_0001>

<bundles_post_ra>
// kernel: tpu_custom_call.1
= control target key start
LH: loop header
LB: loop body
LE: loop exit
PB: predicated region body
PF: predicated region fallthrough
CT: control target
= control target key end

     0   :  { %s1176_s0 = inlined_call_operand.hbm [shape: bf16[2,64,64], index: 0, kind: input, shape index: {}]   ;;  %s1177_s1 = inlined_call_operand.hbm [shape: bf16[64,128], index: 1, kind: input, shape index: {}]   ;;  %s1178_s2 = inlined_call_operand.vmem [shape: f32[1,128], index: 2, kind: input, shape index: {}]   ;;  %s1179_s3 = inlined_call_operand.hbm [shape: f32[2,64,128], index: 3, kind: output, shape index: {}]  }
   0x1   :  { %1181 = sst [smem:[#allocation12_spill]] %s1177_s1 }
   0x2   :  { %8 = vsyncpa [#allocation4], 0 }
   0x3   :  { %10 = vsyncpa [#allocation4 + $0x1], 0 }
   0x4   :  { %11 = vsyncpa [#allocation7], 0 }
   0x5   :  { %12 = vsyncpa [#allocation5], 0 }
   0x6   :  { %14 = vsyncpa [#allocation5 + $0x1], 0  ;;  %s1014_s12 = smov 0   ;;  %s1016_s13 = smov 0  }
   0x7   :  { %s1018_s14 = smov 0   ;;  %s1020_s15 = smov 0  }
   0x8   :  { %s1022_s16 = smov 0   ;;  %s1024_s17 = smov 0  }
   0x9 LB: > { %s681_s18 = sadd.s32 4294967295, %s986_s17   ;;  %s682_s19 = sadd.s32 4294967294, %s986_s17   ;;  %s986_s17 = sphi %s1024_s17, %s20_s17   ;;  %s982_s16 = sphi %s1022_s16, %s1195_s16   ;;  %s978_s15 = sphi %s1020_s15, %s1194_s15   ;;  %s974_s14 = sphi %s1018_s14, %s1193_s14   ;;  %s970_s13 = sphi %s1016_s13, %s1192_s13   ;;  %s966_s12 = sphi %s1014_s12, %s1191_s12  }
   0xa   : > { %p70_p0 = scmp.ne.s32.totalorder %s970_s13, %s966_s12  ;;  %p1048_p1 = scmp.eq.s32.totalorder %s681_s18, 0 }
   0xb   : > { %p1052_p2 = scmp.eq.s32.totalorder %s681_s18, 1  ;;  %p158_p3 = scmp.eq.s32.totalorder %s682_s19, 1 }
   0xc   : > { %p1058_p4 = por %p1048_p1, %p70_p0  ;;  %p683_p5 = scmp.ge.s32.totalorder %s986_s17, 1 }
   0xd   : > { %p1063_p6 = por %p158_p3, %p70_p0  ;;  %p165_p7 = scmp.lt.s32.totalorder %s986_s17, 3 }
   0xe   : > { %s1186_s1 = sld [smem:[#allocation12_spill]]  ;;  %s988_s28 = smov [#allocation6]  }
   0xf   : > { %p1071_p8 = pnand %p683_p5, %p165_p7  ;;  %s182_s29 = sshll.u32 %s988_s28, 4  ;;  %s183_s29 = int_to_ptr.vmem [resolvable:$true] %s182_s29 }
  0x10   : > { %p686_p11 = scmp.ge.s32.totalorder %s986_s17, 2  ;;  %s1180_s30 = smov 64  }
  0x11   : > { %p765_p9 = pneg %p1071_p8  ;;  %s990_s4 = smov 4  }
  0x12   : > { %s46_s5 = sadd.s32 1, %s982_s16  ;;  %s57_s6 = sadd.s32 1, %s974_s14 }
  0x13   : > { %p766_p10 = pnand %p765_p9, %p1048_p1  ;;  %p48_p12 = scmp.ge.s32.totalorder %s46_s5, 2 }
  0x14   : > { %s180_s26 = sshll.u32 %s1186_s1, 4  ;;  %p64_p13 = scmp.ne.s32.totalorder %s974_s14, %s970_s13  ;;  %s181_s26 = int_to_ptr.hbm [resolvable:$true] %s180_s26 }
  0x15   : > { %768 = dma.hbm_to_vmem [thread:$0]  (!%p766_p10), %s181_s26, 512, %s183_s29, [#allocation7], %s1180_s30, %s1180_s30, %s990_s4  }
  0x16   : > { %p65_p0 = scmp.eq.s32.totalorder %s986_s17, 0  ;;  %s1197_s5 = smov (%p48_p12, %s46_s5), 0 }
  0x17   : > { %p1096_p5 = por %p1052_p2, %p64_p13  ;;  %s50_s9 = ssub.s32 %s982_s16, %s1197_s5 }
  0x18   : > { %p1090_p3 = por %p65_p0, %p64_p13  ;;  %p778_p7 = scmp.lt.s32.totalorder %s986_s17, 2 }
  0x19   : > { %p55_p9 = scmp.eq.s32.totalorder %s50_s9, 0  ;;  %s202_s10 = sand.u32 1, %s974_s14  }
  0x1a   : > { %s687_s11 = sshll.u32 %s202_s10, 5  ;;  %s735_s19 = sshll.u32 %s982_s16, 5 }
  0x1b   : > { %s1105_s18 = scalar_select %p55_p9, %s974_s14, %s57_s6  }
  0x1c   : > { %s214_s26 = scalar_lea.hbm %s1176_s0, %s735_s19  ;;  %s206_s28 = scalar_lea.vmem [#allocation3], %s687_s11 }
  0x1d   : > { %s217_s29 = sshll.u32 %s206_s28, 4  ;;  %s215_s21 = sshll.u32 %s214_s26, 4  ;;  %s218_s29 = int_to_ptr.vmem [resolvable:$true] %s217_s29  ;;  %s216_s21 = int_to_ptr.hbm [resolvable:$true] %s215_s21 }
  0x1e   : > { %p770_p2 = pnand %p778_p7, %p1090_p3  ;;  %s203_s30 = scalar_lea.sflag [#allocation4], %s202_s10 }
  0x1f   : > { %s1190_s1 = smov 64   ;;  %229 = sbr.rel (%p1071_p8) target bundleno = 288 (0x120), region = 32 }
  0x20   : > { %772 = dma.hbm_to_vmem [thread:$0]  (!%p770_p2), %s216_s21, 512, %s218_s29, %s203_s30, %s1190_s1, %s1190_s1, %s990_s4  }
  0x21   : > { %s1119_s6 = sand.u32 (!%p1071_p8), 1, %s970_s13  }
  0x22   : > { %s691_s9 = sshll.u32 (!%p1071_p8), %s1119_s6, 5  ;;  %s232_s11 = scalar_lea.sflag (!%p1071_p8), [#allocation4], %s1119_s6 }
  0x23   : > { %s235_s19 = scalar_lea.vmem (!%p1071_p8), [#allocation3], %s691_s9 }
  0x24   : > { %953 = dma.done.wait (%p1058_p4), %s232_s11, 512  }
  0x25   : > { %955 = vsyncadd (%p1058_p4), %s232_s11, 4294966784 }
  0x26   : > { %957 = dma.done.wait (%p1048_p1), [#allocation7], 512  }
  0x27   : > { %959 = vsyncadd (%p1048_p1), [#allocation7], 4294966784  ;;  %v743_v0 = vld [vmem:[#allocation6 + $0x18] sm:$0xff]  ;;  %v742_v1 = vld [vmem:[#allocation6 + $0x10] sm:$0xff]  ;;  %vm334_vm0 = vcmask 523264   ;;  %v991_v16 = vmov 64.0  }
  0x28   : > { %351 = vmatpush.bf16.msra.mxu0 %v743_v0  ;;  %745 = vmatpush.bf16.msra.mxu1 %v743_v0  ;;  %v741_v2 = vld [vmem:[#allocation6 + $0x8] sm:$0xff]  ;;  %v740_v3 = vld [vmem:[#allocation6] sm:$0xff]  ;;  %v738_v6 = vld [vmem:[%s235_s19 + $0x10] sm:$0xff]  ;;  %836 = vrcp.f32 %v991_v16  ;;  %s693_s22 = sshll.u32 %s1119_s6, 6  ;;  %s744_s27 = sshll.u32 %s978_s15, 6 }
  0x29   : > { %746 = vmatpush.bf16.msra.mxu2 %v743_v0  ;;  %747 = vmatpush.bf16.msra.mxu3 %v743_v0  ;;  %v736_v4 = vld [vmem:[%s235_s19] sm:$0xff]  ;;  %v737_v5 = vld [vmem:[%s235_s19 + $0x8] sm:$0xff]  ;;  %v739_v7 = vld [vmem:[%s235_s19 + $0x18] sm:$0xff]  ;;  %s556_s7 = scalar_lea.hbm %s1179_s3, %s744_s27  ;;  %s266_s15 = scalar_lea.vmem [#allocation8], %s693_s22 }
  0x2a   : > { %v835_v10 = vld [vmem:[%s1178_s2] ss:$0 sm:$0xff]  ;;  %s557_s10 = sshll.u32 %s266_s15, 4  ;;  %s559_s24 = sshll.u32 %s556_s7, 4  ;;  %s558_s10 = int_to_ptr.vmem [resolvable:$true] %s557_s10  ;;  %s560_s24 = int_to_ptr.hbm [resolvable:$true] %s559_s24 }
  0x2b   : > { %s542_s25 = scalar_lea.sflag [#allocation5], %s1119_s6  ;;  %s914_s26 = sshra.s32 %s560_s24, 4  ;;  %s915_s26 = int_to_ptr.hbm [resolvable:$true] %s914_s26 }
  0x2c   : > { %352 = vmatpush.bf16.msra.mxu0 %v742_v1  ;;  %748 = vmatpush.bf16.msra.mxu1 %v742_v1  ;;  %s916_s28 = scalar_lea.hbm %s915_s26, 64  ;;  %s920_s9 = scalar_lea.hbm %s1179_s3, 128 }
  0x2d   : > { %749 = vmatpush.bf16.msra.mxu2 %v742_v1  ;;  %750 = vmatpush.bf16.msra.mxu3 %v742_v1  ;;  %p917_p1 = scmp.ne.s32.totalorder %s915_s26, %s916_s28  ;;  %p921_p10 = scmp.lt.s32.totalorder %s915_s26, %s1179_s3 }
  0x2e   : > { %v837_v22 = vpop.eup %836  ;;  %p922_p12 = scmp.lt.s32.totalorder %s920_s9, %s916_s28 }
  0x2f   : > { %v453_v29 = vmul.f32 64.0, %v837_v22  ;;  %vm457_vm1 = vweird.f32 %v837_v22  ;;  %p918_p4 = pnand %p917_p1, %p1096_p5 }
  0x30   : > { %353 = vmatpush.bf16.msra.mxu0 %v741_v2  ;;  %751 = vmatpush.bf16.msra.mxu1 %v741_v2  ;;  %p923_p13 = por %p922_p12, %p921_p10 }
  0x31   : > { %752 = vmatpush.bf16.msra.mxu2 %v741_v2  ;;  %753 = vmatpush.bf16.msra.mxu3 %v741_v2  ;;  %v454_v34 = vsub.f32 1.0, %v453_v29  ;;  %p919_p8 = pneg %p918_p4 }
  0x33   : > { %v455_v37 = vmul.f32 %v837_v22, %v454_v34  ;;  %p924_p0 = pnand %p923_p13, %p919_p8 }
  0x34   : > { %354 = vmatpush.bf16.msra.mxu0 %v740_v3  ;;  %754 = vmatpush.bf16.msra.mxu1 %v740_v3 }
  0x35   : > { %755 = vmatpush.bf16.msra.mxu2 %v740_v3  ;;  %756 = vmatpush.bf16.msra.mxu3 %v740_v3  ;;  %v456_v40 = vadd.f32 %v837_v22, %v455_v37 }
  0x37   : > { %726 = vmatmul.msk.bf16.vlgmr.msra.gmra.mxu0 %vm334_vm0, %v736_v4  ;;  %727 = vmatmul.msk.bf16.vlgmr.msra.gmra.mxu1 %vm334_vm0, %v737_v5  ;;  %v458_v43 = vsel %vm457_vm1, %v837_v22, %v456_v40 }
  0x38   : > { %728 = vmatmul.msk.bf16.vlgmr.msra.gmra.mxu2 %vm334_vm0, %v738_v6  ;;  %729 = vmatmul.msk.bf16.vlgmr.msra.gmra.mxu3 %vm334_vm0, %v739_v7 }
  0xb4   : > { %v356_v8 = vpop.f32.mrf.mxu0  ;;  %v361_v9 = vpop.f32.mrf.mxu1 }
  0xb5   : > { %v384_v14 = vadd.f32 %v835_v10, %v356_v8  ;;  %v386_v18 = vadd.f32 %v835_v10, %v361_v9 }
  0xbb   : > { %v366_v11 = vpop.f32.mrf.mxu2  ;;  %v371_v12 = vpop.f32.mrf.mxu3 }
  0xbc   : > { %v358_v13 = vpop.f32.mrf.mxu0  ;;  %v363_v17 = vpop.f32.mrf.mxu1  ;;  %v388_v23 = vadd.f32 %v835_v10, %v366_v11  ;;  %v390_v30 = vadd.f32 %v835_v10, %v371_v12 }
  0xbd   : > { %v385_v15 = vadd.f32 %v835_v10, %v358_v13  ;;  %v387_v20 = vadd.f32 %v835_v10, %v363_v17 }
  0xbf   : > { %v439_v19 = vadd.f32 %v385_v15, %v384_v14 }
  0xc1   : > { %v440_v21 = vadd.f32 %v439_v19, %v386_v18 }
  0xc3   : > { %v441_v24 = vadd.f32 %v440_v21, %v387_v20  ;;  %v368_v25 = vpop.f32.mrf.mxu2  ;;  %v373_v28 = vpop.f32.mrf.mxu3 }
  0xc4   : > { %v389_v26 = vadd.f32 %v835_v10, %v368_v25  ;;  %v391_v32 = vadd.f32 %v835_v10, %v373_v28 }
  0xc5   : > { %v442_v27 = vadd.f32 %v441_v24, %v388_v23 }
  0xc7   : > { %v443_v31 = vadd.f32 %v442_v27, %v389_v26 }
  0xc9   : > { %v444_v33 = vadd.f32 %v443_v31, %v390_v30 }
  0xcb   : > { %v445_v35 = vadd.f32 %v444_v33, %v391_v32 }
  0xcd   : > { %v446_v36 = vrot.slane %v445_v35, 4 }
  0xcf   : > { %v447_v38 = vadd.f32 %v446_v36, %v445_v35 }
  0xd1   : > { %v448_v39 = vrot.slane %v447_v38, 2 }
  0xd3   : > { %v449_v41 = vadd.f32 %v448_v39, %v447_v38 }
  0xd5   : > { %v450_v42 = vrot.slane %v449_v41, 1 }
  0xd7   : > { %v451_v44 = vadd.f32 %v450_v42, %v449_v41 }
  0xd9   : > { %v459_v45 = vmul.f32 %v458_v43, %v451_v44 }
  0xdb   : > { %v460_v46 = vsub.f32 %v384_v14, %v459_v45  ;;  %v461_v47 = vsub.f32 %v385_v15, %v459_v45  ;;  %v462_v48 = vsub.f32 %v386_v18, %v459_v45  ;;  %v463_v49 = vsub.f32 %v387_v20, %v459_v45 }
  0xdc   : > { %v464_v52 = vsub.f32 %v388_v23, %v459_v45  ;;  %v465_v55 = vsub.f32 %v389_v26, %v459_v45  ;;  %v466_v58 = vsub.f32 %v390_v30, %v459_v45  ;;  %v467_v61 = vsub.f32 %v391_v32, %v459_v45 }
  0xdd   : > { %v468_v50 = vmul.f32 %v460_v46, %v460_v46  ;;  %v469_v51 = vmul.f32 %v461_v47, %v461_v47  ;;  %v470_v53 = vmul.f32 %v462_v48, %v462_v48  ;;  %v471_v56 = vmul.f32 %v463_v49, %v463_v49 }
  0xde   : > { %v472_v59 = vmul.f32 %v464_v52, %v464_v52  ;;  %v473_v62 = vmul.f32 %v465_v55, %v465_v55  ;;  %v474_v0 = vmul.f32 %v466_v58, %v466_v58  ;;  %v475_v2 = vmul.f32 %v467_v61, %v467_v61 }
  0xdf   : > { %v476_v54 = vadd.f32 %v469_v51, %v468_v50 }
  0xe1   : > { %v477_v57 = vadd.f32 %v476_v54, %v470_v53 }
  0xe3   : > { %v478_v60 = vadd.f32 %v477_v57, %v471_v56 }
  0xe5   : > { %v479_v63 = vadd.f32 %v478_v60, %v472_v59 }
  0xe7   : > { %v480_v1 = vadd.f32 %v479_v63, %v473_v62 }
  0xe9   : > { %v481_v3 = vadd.f32 %v480_v1, %v474_v0 }
  0xeb   : > { %v482_v4 = vadd.f32 %v481_v3, %v475_v2 }
  0xed   : > { %v483_v5 = vrot.slane %v482_v4, 4 }
  0xef   : > { %v484_v6 = vadd.f32 %v483_v5, %v482_v4 }
  0xf1   : > { %v485_v7 = vrot.slane %v484_v6, 2 }
  0xf3   : > { %v486_v8 = vadd.f32 %v485_v7, %v484_v6 }
  0xf5   : > { %v487_v9 = vrot.slane %v486_v8, 1 }
  0xf7   : > { %v488_v10 = vadd.f32 %v487_v9, %v486_v8 }
  0xf9   : > { %v489_v11 = vmul.f32 %v488_v10, %v458_v43 }
  0xfb   : > { %v490_v12 = vadd.f32 1e-05, %v489_v11 }
  0xfd   : > { %838 = vrsqrt.f32 %v490_v12  ;;  %vm497_vm3 = vweird.f32 %v490_v12 }
 0x103   : > { %v839_v13 = vpop.eup %838 }
 0x104   : > { %v492_v14 = vmul.f32 %v839_v13, %v490_v12  ;;  %vm498_vm2 = vweird.f32 %v839_v13 }
 0x105   : > { %vm499_vm4 = vmor %vm497_vm3, %vm498_vm2 }
 0x106   : > { %v493_v15 = vmul.f32 %v839_v13, %v492_v14 }
 0x108   : > { %v494_v16 = vmul.f32 0.5, %v493_v15 }
 0x10a   : > { %v495_v17 = vsub.f32 1.5, %v494_v16 }
 0x10c   : > { %v496_v18 = vmul.f32 %v839_v13, %v495_v17 }
 0x10e   : > { %v500_v19 = vsel %vm499_vm4, %v839_v13, %v496_v18 }
 0x10f   : > { %v501_v20 = vmul.f32 %v500_v19, %v460_v46  ;;  %v502_v21 = vmul.f32 %v500_v19, %v461_v47  ;;  %v503_v22 = vmul.f32 %v500_v19, %v462_v48  ;;  %v504_v23 = vmul.f32 %v500_v19, %v463_v49 }
 0x110   : > { %v505_v24 = vmul.f32 %v500_v19, %v464_v52  ;;  %v506_v25 = vmul.f32 %v500_v19, %v465_v55  ;;  %v507_v26 = vmul.f32 %v500_v19, %v466_v58  ;;  %v508_v27 = vmul.f32 %v500_v19, %v467_v61 }
 0x111   : > { %vm509_vm5 = vcmp.ge.f32.partialorder %v501_v20, 0.0  ;;  %vm510_vm6 = vcmp.ge.f32.partialorder %v502_v21, 0.0  ;;  %vm511_vm7 = vcmp.ge.f32.partialorder %v503_v22, 0.0  ;;  %vm512_vm8 = vcmp.ge.f32.partialorder %v504_v23, 0.0 }
 0x112   : > { %vm513_vm9 = vcmp.ge.f32.partialorder %v505_v24, 0.0  ;;  %v517_v28 = vmul.f32 0.2, %v501_v20  ;;  %v518_v29 = vmul.f32 0.2, %v502_v21  ;;  %vm514_vm10 = vcmp.ge.f32.partialorder %v506_v25, 0.0 }
 0x113   : > { %v519_v30 = vmul.f32 0.2, %v503_v22  ;;  %v520_v31 = vmul.f32 0.2, %v504_v23  ;;  %v521_v32 = vmul.f32 0.2, %v505_v24 }
 0x114   : > { %v522_v33 = vmul.f32 0.2, %v506_v25  ;;  %v523_v34 = vmul.f32 0.2, %v507_v26  ;;  %v525_v35 = vsel %vm509_vm5, %v501_v20, %v517_v28  ;;  %v526_v36 = vsel %vm510_vm6, %v502_v21, %v518_v29 }
 0x115   : > { %vm515_vm11 = vcmp.ge.f32.partialorder %v507_v26, 0.0  ;;  %v524_v37 = vmul.f32 0.2, %v508_v27  ;;  %v527_v38 = vsel %vm511_vm7, %v503_v22, %v519_v30  ;;  %v528_v39 = vsel %vm512_vm8, %v504_v23, %v520_v31  ;;  %533 = vst [vmem:[%s266_s15] sm:$0xff] %v525_v35 }
 0x116   : > { %vm516_vm12 = vcmp.ge.f32.partialorder %v508_v27, 0.0  ;;  %v529_v40 = vsel %vm513_vm9, %v505_v24, %v521_v32  ;;  %534 = vst [vmem:[%s266_s15 + $0x8] sm:$0xff] %v526_v36  ;;  %v530_v41 = vsel %vm514_vm10, %v506_v25, %v522_v33  ;;  %v531_v42 = vsel %vm515_vm11, %v507_v26, %v523_v34 }
 0x117   : > { %535 = vst [vmem:[%s266_s15 + $0x10] sm:$0xff] %v527_v38  ;;  %v532_v43 = vsel %vm516_vm12, %v508_v27, %v524_v37 }
 0x118   : > { %536 = vst [vmem:[%s266_s15 + $0x18] sm:$0xff] %v528_v39 }
 0x119   : > { %537 = vst [vmem:[%s266_s15 + $0x20] sm:$0xff] %v529_v40 }
 0x11a   : > { %538 = vst [vmem:[%s266_s15 + $0x28] sm:$0xff] %v530_v41 }
 0x11b   : > { %539 = vst [vmem:[%s266_s15 + $0x30] sm:$0xff] %v531_v42 }
 0x11c   : > { %540 = vst [vmem:[%s266_s15 + $0x38] sm:$0xff] %v532_v43 }
 0x11d   : > { %927 = shalt.err (!%p924_p0)
}
 0x11e   : > { %s992_s6 = smov 128   ;;  %s993_s1 = smov 8  }
 0x11f   : > { %763 = dma.vmem_to_hbm [thread:$0]  (%p1096_p5), %s558_s10, 1024, %s560_s24, %s542_s25, %s992_s6, %s992_s6, %s993_s1  }
 0x120 PF: > { %s574_s20 = sand.u32 1, %s966_s12   ;;  %p774_p3 = pnand %p686_p11, %p1063_p6 }
 0x121   : > { %s575_s22 = scalar_lea.sflag [#allocation5], %s574_s20 }
 0x122   : > { %p775_p7 = pneg %p774_p3 }
 0x124   : > { %961 = dma.done.wait (%p775_p7), %s575_s22, 1024  }
 0x125   : > { %963 = vsyncadd (%p775_p7), %s575_s22, 4294966272  ;;  %s20_s17 = sadd.s32 1, %s986_s17   ;;  %s1191_s12 = smov %s970_s13 }
 0x126   : > { %p17_p9 = scmp.ge.s32.totalorder %s20_s17, 4   ;;  %s1192_s13 = smov %s974_s14 }
 0x127   : > { %s1193_s14 = smov %s1105_s18  ;;  %s1194_s15 = smov %s982_s16 }
 0x128   : > { %s1195_s16 = smov %s1197_s5  ;;  %19 = sbr.rel (!%p17_p9) target bundleno = 9 (0x9), region = 97 }
 0x12d   :  { %581 = vsyncpa [#allocation4], 1 }
 0x12e   :  { %583 = vsyncpa [#allocation4 + $0x1], 1 }
 0x12f   :  { %584 = vsyncpa [#allocation7], 1 }
 0x130   :  { %585 = vsyncpa [#allocation5], 1 }
 0x131   :  { %587 = vsyncpa [#allocation5 + $0x1], 1 }

</bundles_post_ra>
